<compile_context>
chip_gen: v6e
topology: v6e:2x2x1
jax: 0.10.0
libtpu: 0.0.40
codegen_flags: <defaults>
</compile_context>

<pallas_src>
import functools

import jax
import jax.numpy as jnp
from jax.experimental import pallas as pl
from jax.experimental.pallas import tpu as pltpu


def _norm_kernel(x_ref, alpha_ref, bias_ref, o_ref, *, d_model, eps,
                 low_precision_affine):
    # NOTE: garbage rows in the masked partial last block can produce Inf/NaN
    # in `inv`; harmless because every computation here is row-local and the
    # partial-block stores are masked.  Do NOT add cross-row reductions here
    # without revisiting that.
    x = x_ref[...].astype(jnp.float32)                     # (block_rows, D)
    mean = jnp.mean(x, axis=-1, keepdims=True)             # (block_rows, 1)
    xc = x - mean
    # torch.std defaults to unbiased (divide by N-1); two-pass centered form
    # kept for numerical robustness (cancellation-free).
    var = jnp.sum(xc * xc, axis=-1, keepdims=True) * (1.0 / (d_model - 1))
    # Exact reciprocal of an (R, 1) column; cheap (EUP), and approx=True is
    # not worth re-validating the 1e-5 tolerance for.
    inv = pl.reciprocal(jnp.sqrt(var) + eps)
    xn = xc * inv                                          # (block_rows, D)
    if low_precision_affine:
        # bf16/f16 I/O: do the per-element affine + store in the narrow dtype
        # to halve VALU work (native packed-bf16 VALU on v6e/v7x).
        o_ref[...] = xn.astype(o_ref.dtype) * alpha_ref[...] + bias_ref[...]
    else:
        alpha = alpha_ref[...].astype(jnp.float32)         # (1, D)
        bias = bias_ref[...].astype(jnp.float32)           # (1, D)
        o_ref[...] = (xn * alpha + bias).astype(o_ref.dtype)


def _round_up(v, m):
    return -(-v // m) * m


def _vmem_config():
    """Per-generation VMEM budgets.

    v7x has only 64 MiB VMEM per TensorCore -> leave headroom below physical.
    v5e/v6e have 128 MiB -> tile considerably larger.
    """
    vmem_phys = 64 << 20            # conservative default (v7x per-TC size)
    try:
        info = pltpu.get_tpu_info()
        vmem_phys = int(getattr(info, "vmem_capacity_bytes", vmem_phys))
    except Exception:
        pass
    if vmem_phys <= (64 << 20):
        vmem_limit = 48 << 20       # v7x: headroom for Mosaic scratch / sems
        two_cores = True            # v7x: 2 TensorCores per chip
    else:
        vmem_limit = 96 << 20       # v5e / v6e: 128 MiB physical
        two_cores = False
    tile_budget = vmem_limit // 2   # in+out double-buffered tiles + f32 temps
    return vmem_limit, tile_budget, two_cores


def _choose_block_rows(rows, d_model, itemsize, tile_budget_bytes, two_cores):
    """Row-tile size chosen by a bytes-per-step target, capped by a VMEM model
    that includes the in-kernel f32 temporaries."""
    # Sublane packing granularity by dtype width.
    if itemsize >= 4:
        gran = 8
    elif itemsize == 2:
        gran = 16
    else:
        gran = 32
    rows_padded = _round_up(rows, gran)

    # VMEM footprint per tile row:
    #   double-buffered input + output tiles (2 bufs each) -> 4 * D * itemsize
    #   f32 temporaries (x upcast + xc, live across the 2nd reduction),
    #   single-buffered                                     -> 2 * 4 * D
    per_row_vmem = 4 * d_model * itemsize + 8 * d_model
    vmem_max_rows = max(gran, tile_budget_bytes // per_row_vmem)

    # HBM traffic per row (read + write): aim for ~8 MiB per grid step so the
    # ~0.35 us per-step overhead stays <~5% even at v7x's 3.2 TB/s.
    per_row_io = 2 * d_model * itemsize
    target_step_bytes = 8 << 20
    target_rows = max(gran, -(-target_step_bytes // per_row_io))

    block_rows = max(gran, (min(vmem_max_rows, target_rows) // gran) * gran)
    block_rows = min(block_rows, rows_padded)

    # v7x: keep the "parallel" step count even so the two TensorCores get a
    # balanced split (an odd 3-step grid would idle one core 33% of the time).
    steps = -(-rows // block_rows)
    if two_cores and steps > 1 and steps % 2 == 1:
        block_rows = min(rows_padded,
                         max(gran, _round_up(-(-rows // (steps + 1)), gran)))
    return block_rows


def norm_pallas(x, alpha, bias, eps=1e-6, block_rows=None):
    orig_shape = x.shape
    d_model = orig_shape[-1]
    if d_model < 2:
        raise ValueError("Norm requires d_model >= 2 (unbiased std uses N-1).")
    x2 = x.reshape(-1, d_model)
    rows = x2.shape[0]
    itemsize = jnp.dtype(x.dtype).itemsize

    vmem_limit, tile_budget, two_cores = _vmem_config()
    if block_rows is None:
        block_rows = _choose_block_rows(rows, d_model, itemsize,
                                        tile_budget, two_cores)

    low_precision_affine = jnp.dtype(x.dtype) in (jnp.dtype(jnp.bfloat16),
                                                  jnp.dtype(jnp.float16))
    # Params ride in x's dtype; the (1, D) casts are negligible.
    alpha2 = alpha.reshape(1, d_model).astype(x.dtype)
    bias2 = bias.reshape(1, d_model).astype(x.dtype)

    # NOTE: best store efficiency when d_model is a multiple of 128
    # (lane-dense output); smaller d_model still works via masked stores.
    # TODO(synk): for d_model < 128, pack k=128//d_model tokens per lane-row
    # (block-diagonal MXU row sums) to avoid masked vst.msk partial stores.

    kernel = functools.partial(_norm_kernel, d_model=d_model, eps=eps,
                               low_precision_affine=low_precision_affine)
    grid = pl.cdiv(rows, block_rows)  # partial last block handled by Pallas

    out = pl.pallas_call(
        kernel,
        out_shape=jax.ShapeDtypeStruct((rows, d_model), x.dtype),
        grid_spec=pltpu.PrefetchScalarGridSpec(
            num_scalar_prefetch=0,
            grid=(grid,),
            in_specs=[
                pl.BlockSpec((block_rows, d_model), lambda i: (i, 0)),
                pl.BlockSpec((1, d_model), lambda i: (0, 0)),
                pl.BlockSpec((1, d_model), lambda i: (0, 0)),
            ],
            out_specs=pl.BlockSpec((block_rows, d_model), lambda i: (i, 0)),
        ),
        compiler_params=pltpu.CompilerParams(
            dimension_semantics=("parallel",),
            vmem_limit_bytes=vmem_limit,
        ),
    )(x2, alpha2, bias2)

    return out.reshape(orig_shape)


def _reference(x, alpha, bias, eps):
    d = x.shape[-1]
    x = x.astype(jnp.float32)
    mean = jnp.mean(x, axis=-1, keepdims=True)
    std = jnp.sqrt(jnp.sum((x - mean) ** 2, axis=-1, keepdims=True) / (d - 1))
    return alpha * (x - mean) / (std + eps) + bias


if __name__ == "__main__":
    key = jax.random.PRNGKey(0)
    k1, k2, k3 = jax.random.split(key, 3)

    # Case 1: lane-dense d_model (multiple of 128), small batch/seq, f32.
    d_model = 128
    batch, seq = 2, 8
    x1 = jax.random.normal(k1, (batch, seq, d_model), dtype=jnp.float32)
    alpha1 = jnp.ones((d_model,), dtype=jnp.float32)   # nn.Parameter(ones)
    bias1 = jnp.zeros((d_model,), dtype=jnp.float32)   # nn.Parameter(zeros)

    out1 = jax.block_until_ready(norm_pallas(x1, alpha1, bias1, eps=1e-6))
    ref1 = _reference(x1, alpha1, bias1, 1e-6)
    assert jnp.allclose(out1, ref1, atol=1e-5, rtol=1e-5)

    # Case 2: non-aligned row count + small d_model (exercises the masked
    # partial last block; no host-side padding copies).
    d_model2 = 32
    x2 = jax.random.normal(k2, (3, 7, d_model2), dtype=jnp.float32)
    alpha2 = jnp.ones((d_model2,), dtype=jnp.float32)
    bias2 = jnp.zeros((d_model2,), dtype=jnp.float32)

    out2 = jax.block_until_ready(norm_pallas(x2, alpha2, bias2, eps=1e-6))
    ref2 = _reference(x2, alpha2, bias2, 1e-6)
    assert jnp.allclose(out2, ref2, atol=1e-5, rtol=1e-5)

    # Case 3: bf16 I/O exercises the low-precision affine path.
    d_model3 = 256
    x3 = jax.random.normal(k3, (2, 8, d_model3), dtype=jnp.float32) * 2.0 + 0.5
    x3 = x3.astype(jnp.bfloat16)
    alpha3 = jnp.ones((d_model3,), dtype=jnp.float32)
    bias3 = jnp.zeros((d_model3,), dtype=jnp.float32)

    out3 = jax.block_until_ready(norm_pallas(x3, alpha3, bias3, eps=1e-6))
    ref3 = _reference(x3, alpha3, bias3, 1e-6)
    assert jnp.allclose(out3.astype(jnp.float32), ref3, atol=3e-2, rtol=3e-2)

    print("KERNEL_OK")
</pallas_src>

<mosaic_0001>
module attributes {stable_mosaic.version = 11 : i64} {
  func.func @_norm_kernel(%arg0: i32, %arg1: memref<16x128xf32, #tpu.memory_space<vmem>>, %arg2: memref<1x128xf32, #tpu.memory_space<vmem>>, %arg3: memref<1x128xf32, #tpu.memory_space<vmem>>, %arg4: memref<16x128xf32, #tpu.memory_space<vmem>>) attributes {dimension_semantics = [#tpu.dimension_semantics<parallel>], iteration_bounds = array<i64: 1>, scalar_prefetch = 0 : i64, scratch_operands = 0 : i64, tpu.core_type = #tpu.core_type<tc>, window_params = [{transform_indices = @transform_0, window_bounds = array<i64: 16, 128>}, {pipeline_mode = #tpu.pipeline_mode<synchronous>, transform_indices = @transform_1, window_bounds = array<i64: 1, 128>}, {pipeline_mode = #tpu.pipeline_mode<synchronous>, transform_indices = @transform_2, window_bounds = array<i64: 1, 128>}, {transform_indices = @transform_3, window_bounds = array<i64: 16, 128>}]} {
    %c0 = arith.constant 0 : index
    %c0_0 = arith.constant 0 : index
    %0 = vector.load %arg1[%c0, %c0_0] : memref<16x128xf32, #tpu.memory_space<vmem>>, vector<16x128xf32>
    %cst = arith.constant dense<0.000000e+00> : vector<16xf32>
    %1 = vector.multi_reduction <add>, %0, %cst [1] : vector<16x128xf32> to vector<16xf32>
    %2 = vector.shape_cast %1 : vector<16xf32> to vector<16x1xf32>
    %cst_1 = arith.constant 1.280000e+02 : f32
    %3 = vector.broadcast %cst_1 : f32 to vector<16x1xf32>
    %4 = arith.divf %2, %3 : vector<16x1xf32>
    %5 = vector.broadcast %4 : vector<16x1xf32> to vector<16x128xf32>
    %6 = arith.subf %0, %5 : vector<16x128xf32>
    %7 = arith.mulf %6, %6 : vector<16x128xf32>
    %cst_2 = arith.constant dense<0.000000e+00> : vector<16xf32>
    %8 = vector.multi_reduction <add>, %7, %cst_2 [1] : vector<16x128xf32> to vector<16xf32>
    %9 = vector.shape_cast %8 : vector<16xf32> to vector<16x1xf32>
    %cst_3 = arith.constant 0.00787401571 : f32
    %10 = vector.broadcast %cst_3 : f32 to vector<16x1xf32>
    %11 = arith.mulf %9, %10 : vector<16x1xf32>
    %12 = math.sqrt %11 : vector<16x1xf32>
    %cst_4 = arith.constant 9.99999997E-7 : f32
    %13 = vector.broadcast %cst_4 : f32 to vector<16x1xf32>
    %14 = arith.addf %12, %13 : vector<16x1xf32>
    %15 = tpu.reciprocal %14 : vector<16x1xf32> -> vector<16x1xf32>
    %16 = vector.broadcast %15 : vector<16x1xf32> to vector<16x128xf32>
    %17 = arith.mulf %6, %16 : vector<16x128xf32>
    %c0_5 = arith.constant 0 : index
    %c0_6 = arith.constant 0 : index
    %18 = vector.load %arg2[%c0_5, %c0_6] : memref<1x128xf32, #tpu.memory_space<vmem>>, vector<1x128xf32>
    %c0_7 = arith.constant 0 : index
    %c0_8 = arith.constant 0 : index
    %19 = vector.load %arg3[%c0_7, %c0_8] : memref<1x128xf32, #tpu.memory_space<vmem>>, vector<1x128xf32>
    %20 = vector.broadcast %18 : vector<1x128xf32> to vector<16x128xf32>
    %21 = arith.mulf %17, %20 : vector<16x128xf32>
    %22 = vector.broadcast %19 : vector<1x128xf32> to vector<16x128xf32>
    %23 = arith.addf %21, %22 : vector<16x128xf32>
    %c0_9 = arith.constant 0 : index
    %c0_10 = arith.constant 0 : index
    %24 = vector.load %arg4[%c0_9, %c0_10] : memref<16x128xf32, #tpu.memory_space<vmem>>, vector<16x128xf32>
    tpu.vector_store %arg4[%c0_9, %c0_10], %23 {strides = array<i32>} : memref<16x128xf32, #tpu.memory_space<vmem>>, vector<16x128xf32>,
    return
  }
  func.func @transform_0(%arg0: i32) -> (i32, i32) {
    %c0_i32 = arith.constant 0 : i32
    %c0_i32_0 = arith.constant 0 : i32
    return %arg0, %c0_i32 : i32, i32
  }
  func.func @transform_1(%arg0: i32) -> (i32, i32) {
    %c0_i32 = arith.constant 0 : i32
    %c0_i32_0 = arith.constant 0 : i32
    %c0_i32_1 = arith.constant 0 : i32
    return %c0_i32, %c0_i32_0 : i32, i32
  }
  func.func @transform_2(%arg0: i32) -> (i32, i32) {
    %c0_i32 = arith.constant 0 : i32
    %c0_i32_0 = arith.constant 0 : i32
    %c0_i32_1 = arith.constant 0 : i32
    return %c0_i32, %c0_i32_0 : i32, i32
  }
  func.func @transform_3(%arg0: i32) -> (i32, i32) {
    %c0_i32 = arith.constant 0 : i32
    %c0_i32_0 = arith.constant 0 : i32
    return %arg0, %c0_i32 : i32, i32
  }
}

</mosaic_0001>

<bundles_post_ra>
// kernel: tpu_custom_call.1
= control target key start
LH: loop header
LB: loop body
LE: loop exit
PB: predicated region body
PF: predicated region fallthrough
CT: control target
= control target key end

     0   :  { %8 = vsyncpa [#allocation3], 0  ;;  %s205_s0 = inlined_call_operand.hbm [shape: f32[16,128], index: 0, kind: input, shape index: {}]   ;;  %s206_s1 = inlined_call_operand.vmem [shape: f32[1,128], index: 1, kind: input, shape index: {}]   ;;  %s207_s2 = inlined_call_operand.vmem [shape: f32[1,128], index: 2, kind: input, shape index: {}]   ;;  %s208_s3 = inlined_call_operand.hbm [shape: f32[16,128], index: 3, kind: output, shape index: {}]  }
   0x1   :  { %9 = vsyncpa [#allocation4], 0  ;;  %s163_s12 = smov [#allocation2]  }
   0x2   :  { %s15_s13 = sshll.u32 %s163_s12, 4  ;;  %s16_s13 = int_to_ptr.vmem [resolvable:$true] %s15_s13 }
   0x3   :  { %s127_s14 = scalar_lea.vmem %s16_s13, 256  ;;  %p132_p1 = scmp.lt.s32.totalorder %s16_s13, %s16_s13 }
   0x4   :  { %p128_p0 = scmp.ne.s32.totalorder %s16_s13, %s127_s14  ;;  %p133_p2 = scmp.lt.s32.totalorder %s127_s14, %s127_s14 }
   0x6   :  { %p134_p3 = por %p133_p2, %p132_p1 }
   0x8   :  { %p135_p4 = pnand %p134_p3, %p128_p0 }
   0xa   :  { %138 = shalt.err (!%p135_p4)
}
   0xb   :  { %s164_s15 = smov 128   ;;  %s165_s16 = smov 8  }
   0xc   :  { %21 = dma.hbm_to_vmem [thread:$0]  %s205_s0, 256, %s16_s13, [#allocation3], %s164_s15, %s164_s15, %s165_s16  }
   0xd   :  { %159 = dma.done.wait [#allocation3], 256  }
   0xe   :  { %160 = vsyncadd [#allocation3], 4294967040  ;;  %v29_v0 = vld [vmem:[#allocation2] sm:$0xff]  ;;  %v30_v1 = vld [vmem:[#allocation2 + $0x8] sm:$0xff]  ;;  %s166_s22 = smov [#allocation5]  }
   0xf   :  { %31 = vadd.xlane.f32.xlu0 %v29_v0  ;;  %v105_v27 = vld [vmem:[%s206_s1] ss:$0 sm:$0xff]  ;;  %s93_s23 = sshll.u32 %s166_s22, 4  ;;  %s94_s23 = int_to_ptr.vmem [resolvable:$true] %s93_s23 }
  0x10   :  { %v106_v29 = vld [vmem:[%s207_s2] ss:$0 sm:$0xff]  ;;  %s139_s24 = scalar_lea.vmem %s94_s23, 256  ;;  %p144_p6 = scmp.lt.s32.totalorder %s94_s23, %s94_s23 }
  0x11   :  { %p140_p5 = scmp.ne.s32.totalorder %s94_s23, %s139_s24  ;;  %p145_p7 = scmp.lt.s32.totalorder %s139_s24, %s139_s24 }
  0x13   :  { %33 = vadd.xlane.f32.xlu0 %v30_v1  ;;  %p146_p8 = por %p145_p7, %p144_p6 }
  0x15   :  { %p147_p9 = pnand %p146_p8, %p140_p5 }
  0x98   :  { %v32_v2 = vpop.xlane.xlu0 %31 }
  0x99   :  { %v36_v3 = vmul.f32 0.0078125, %v32_v2 }
  0x9b   :  { %v38_v4 = vsub.f32 %v29_v0, %v36_v3 }
  0x9c   :  { %v34_v5 = vpop.xlane.xlu0 %33 }
  0x9d   :  { %v37_v6 = vmul.f32 0.0078125, %v34_v5  ;;  %v40_v7 = vmul.f32 %v38_v4, %v38_v4 }
  0x9f   :  { %v39_v8 = vsub.f32 %v30_v1, %v37_v6  ;;  %42 = vadd.xlane.f32.xlu1 %v40_v7 }
  0xa1   :  { %v41_v9 = vmul.f32 %v39_v8, %v39_v8 }
  0xa3   :  { %44 = vadd.xlane.f32.xlu1 %v41_v9 }
 0x128   :  { %v43_v10 = vpop.xlane.xlu1 %42 }
 0x129   :  { %v46_v11 = vmul.f32 0.007874016, %v43_v10 }
 0x12b   :  { %111 = vrsqrt.f32 %v46_v11  ;;  %vm50_vm0 = vcmp.eq.f32.partialorder %v46_v11, inf  ;;  %v53_v16 = vand.u32 2147483648, %v46_v11  ;;  %vm52_vm1 = vcmp.eq.f32.partialorder %v46_v11, 0.0 }
 0x12c   :  { %v45_v12 = vpop.xlane.xlu1 %44 }
 0x12d   :  { %v47_v13 = vmul.f32 0.007874016, %v45_v12 }
 0x12f   :  { %113 = vrsqrt.f32 %v47_v13  ;;  %vm57_vm2 = vcmp.eq.f32.partialorder %v47_v13, inf  ;;  %v60_v22 = vand.u32 2147483648, %v47_v13  ;;  %vm59_vm3 = vcmp.eq.f32.partialorder %v47_v13, 0.0 }
 0x138   :  { %v112_v14 = vpop.eup %111 }
 0x139   :  { %v49_v15 = vmul.f32 %v112_v14, %v46_v11 }
 0x13b   :  { %v51_v17 = vsel %vm50_vm0, %v46_v11, %v49_v15 }
 0x13c   :  { %v114_v18 = vpop.eup %113  ;;  %v54_v19 = vsel %vm52_vm1, %v53_v16, %v51_v17 }
 0x13d   :  { %v62_v20 = vadd.f32 1e-06, %v54_v19  ;;  %v56_v21 = vmul.f32 %v114_v18, %v47_v13 }
 0x13f   :  { %115 = vrcp.f32 %v62_v20  ;;  %v58_v23 = vsel %vm57_vm2, %v47_v13, %v56_v21 }
 0x140   :  { %v61_v24 = vsel %vm59_vm3, %v60_v22, %v58_v23 }
 0x141   :  { %v63_v25 = vadd.f32 1e-06, %v61_v24 }
 0x143   :  { %117 = vrcp.f32 %v63_v25 }
 0x14c   :  { %v116_v26 = vpop.eup %115 }
 0x14d   :  { %v66_v28 = vmul.f32 %v116_v26, %v38_v4 }
 0x14f   :  { %v76_v30 = vmul.f32 %v105_v27, %v66_v28 }
 0x150   :  { %v118_v31 = vpop.eup %117 }
 0x151   :  { %v67_v32 = vmul.f32 %v118_v31, %v39_v8  ;;  %v84_v33 = vadd.f32 %v106_v29, %v76_v30 }
 0x153   :  { %v77_v34 = vmul.f32 %v105_v27, %v67_v32  ;;  %86 = vst [vmem:[#allocation5] sm:$0xff] %v84_v33 }
 0x155   :  { %v85_v35 = vadd.f32 %v106_v29, %v77_v34 }
 0x157   :  { %87 = vst [vmem:[#allocation5 + $0x8] sm:$0xff] %v85_v35 }
 0x158   :  { %150 = shalt.err (!%p147_p9)
}
 0x159   :  { %99 = dma.vmem_to_hbm [thread:$0]  %s94_s23, 256, %s208_s3, [#allocation4], %s164_s15, %s164_s15, %s165_s16  }
 0x15a   :  { %161 = dma.done.wait [#allocation4], 256  }
 0x15b   :  { %162 = vsyncadd [#allocation4], 4294967040 }
 0x15c   :  { %103 = vsyncpa [#allocation3], 1 }
 0x15d   :  { %104 = vsyncpa [#allocation4], 1 }

</bundles_post_ra>
